<compile_context>
chip_gen: v7x
topology: tpu7x:2x2x1
jax: 0.10.0
libtpu: 0.0.40
codegen_flags: <defaults>
</compile_context>

<pallas_src>
import functools

import jax
import jax.numpy as jnp
from jax.experimental import pallas as pl
from jax.experimental.pallas import tpu as pltpu

MAX_TYPE_LIST = [
    "softmax",
    "abs-max",
    "square-max",
    "plus-one-abs-max",
    "non-negative-max",
]


def _max_loss_kernel(x_ref, t_ref, out_ref, acc_ref, *, max_type, n_total):
    pid = pl.program_id(0)
    n_steps = pl.num_programs(0)

    @pl.when(pid == 0)
    def _init():
        acc_ref[...] = jnp.zeros_like(acc_ref)

    x = x_ref[...].astype(jnp.float32)      # (C, tile_n), cast-on-load
    t = t_ref[...]                          # (1, tile_n) int32
    c, cols = x.shape

    # One-hot selection of the target class per column (sublane-axis iota).
    row = jax.lax.broadcasted_iota(jnp.int32, (c, cols), 0)
    hit = row == t                          # broadcast (1, cols) over sublanes

    if max_type == "softmax":
        # log-softmax picked value per column: (x_t - m) - lse
        m = jnp.max(x, axis=0, keepdims=True)
        shifted = x - m
        lse = jnp.log(jnp.sum(jnp.exp(shifted), axis=0, keepdims=True))
        picked = jnp.sum(jnp.where(hit, shifted, 0.0), axis=0, keepdims=True) - lse
    else:
        if max_type == "abs-max":
            v = jnp.abs(x)
            den = jnp.sum(v, axis=0, keepdims=True)
        elif max_type == "square-max":
            v = x * x
            den = jnp.sum(v, axis=0, keepdims=True)
        elif max_type == "plus-one-abs-max":
            v = jnp.abs(x) + 1.0
            den = jnp.sum(v, axis=0, keepdims=True)
        elif max_type == "non-negative-max":
            v = jnp.maximum(x, 0.0)
            den = jnp.sum(v, axis=0, keepdims=True) + 1e-08
        else:
            raise ValueError(max_type)
        num = jnp.sum(jnp.where(hit, v, 0.0), axis=0, keepdims=True)
        # NOTE: pl.reciprocal(approx=True) would be an EUP micro-opt, but it
        # must be validated against the 1e-5 tolerance first; keep exact divide.
        picked = num / den                  # (1, cols)

    is_last = pid == n_steps - 1

    @pl.when(pid < n_steps - 1)
    def _accumulate_full_tile():
        acc_ref[...] += picked              # unmasked path for full tiles

    @pl.when(is_last)
    def _accumulate_partial_and_finalize():
        # Only the last tile can be partial: mask padded columns (where-select,
        # so garbage / NaN in the padded region never propagates).
        col_ids = jax.lax.broadcasted_iota(jnp.int32, (1, cols), 1) + pid * cols
        valid = col_ids < n_total
        acc_ref[...] += jnp.where(valid, picked, 0.0)
        # Single cross-lane reduce + SMEM scalar store, once per kernel.
        out_ref[0, 0] = jnp.sum(acc_ref[...]) * jnp.float32(-1.0 / n_total)


def max_loss(inputs, target, max_type, *, tile_n=4096):
    """Pallas implementation of MaxLoss(max_type)(inputs, target)."""
    assert max_type in MAX_TYPE_LIST
    n, c = inputs.shape

    # Lane-dense (C, N) layout: one wrapper-side transpose pass over the input
    # buys ~12.8x denser VPU/EUP/XLU work and contiguous DMA lines in-kernel.
    x_t = jnp.transpose(inputs)                      # (C, N), native dtype
    t_row = target.astype(jnp.int32).reshape(1, n)   # lane-dense target row

    if n <= tile_n:
        tn = n                                # single grid step, full-extent block
    else:
        tn = max(128, (tile_n // 128) * 128)  # lane rule: multiple of 128
    grid = (pl.cdiv(n, tn),)

    kernel = functools.partial(_max_loss_kernel, max_type=max_type, n_total=n)

    out = pl.pallas_call(
        kernel,
        out_shape=jax.ShapeDtypeStruct((1, 1), jnp.float32),
        grid=grid,
        in_specs=[
            pl.BlockSpec((c, tn), lambda i: (0, i)),   # logits block (C, tile_n)
            pl.BlockSpec((1, tn), lambda i: (0, i)),   # targets block (1, tile_n)
        ],
        out_specs=pl.BlockSpec(memory_space=pltpu.MemorySpace.SMEM),
        scratch_shapes=[pltpu.VMEM((1, tn), jnp.float32)],   # vector accumulator
        compiler_params=pltpu.CompilerParams(
            dimension_semantics=("arbitrary",)),   # grid axis carries the accumulator
    )(x_t, t_row)
    return out[0, 0]


def max_loss_ref(inputs, target, max_type):
    """Pure-JAX reference mirroring the PyTorch module."""
    x = inputs.astype(jnp.float32)
    if max_type == "softmax":
        pred = jnp.log(jax.nn.softmax(x, axis=1))
    elif max_type == "abs-max":
        a = jnp.abs(x)
        pred = a / jnp.sum(a, axis=1, keepdims=True)
    elif max_type == "square-max":
        s = x * x
        pred = s / jnp.sum(s, axis=1, keepdims=True)
    elif max_type == "plus-one-abs-max":
        a = jnp.abs(x) + 1.0
        pred = a / jnp.sum(a, axis=1, keepdims=True)
    elif max_type == "non-negative-max":
        cl = jnp.maximum(x, 0.0)
        pred = cl / (jnp.sum(cl, axis=1, keepdims=True) + 1e-08)
    picked = jnp.take_along_axis(pred, target.reshape(-1, 1), axis=1)
    return -jnp.mean(picked)


if __name__ == "__main__":
    key = jax.random.PRNGKey(0)
    C = 10                                  # SVHN: 10 classes
    k_x, k_t, k_x2, k_t2 = jax.random.split(key, 4)

    # Case 1: small batch, single grid step, full-extent (non-128) block.
    x_small = jax.random.normal(k_x, (8, C), dtype=jnp.float32)
    t_small = jax.random.randint(k_t, (8,), 0, C, dtype=jnp.int32)

    # Case 2: batched path — multi-step grid over column tiles with a partial
    # last tile (300 examples, 128-wide tiles -> 3 steps, last tile masked).
    x_big = jax.random.normal(k_x2, (300, C), dtype=jnp.float32)
    t_big = jax.random.randint(k_t2, (300,), 0, C, dtype=jnp.int32)

    for max_type in MAX_TYPE_LIST:
        out = jax.block_until_ready(max_loss(x_small, t_small, max_type))
        ref = jax.block_until_ready(max_loss_ref(x_small, t_small, max_type))
        assert jnp.allclose(out, ref, atol=1e-5, rtol=1e-5), (max_type, out, ref)

        out = jax.block_until_ready(max_loss(x_big, t_big, max_type, tile_n=128))
        ref = jax.block_until_ready(max_loss_ref(x_big, t_big, max_type))
        assert jnp.allclose(out, ref, atol=1e-5, rtol=1e-5), (max_type, out, ref)

    print("KERNEL_OK")
</pallas_src>

<mosaic_0001>
module attributes {stable_mosaic.version = 11 : i64} {
  func.func @_max_loss_kernel(%arg0: i32, %arg1: memref<10x8xf32, #tpu.memory_space<vmem>>, %arg2: memref<1x8xi32, #tpu.memory_space<vmem>>, %arg3: memref<1x1xf32, #tpu.memory_space<smem>>, %arg4: memref<1x8xf32, #tpu.memory_space<vmem>>) attributes {dimension_semantics = [#tpu.dimension_semantics<arbitrary>], iteration_bounds = array<i64: 1>, scalar_prefetch = 0 : i64, scratch_operands = 1 : i64, tpu.core_type = #tpu.core_type<tc>, window_params = [{transform_indices = @transform_0, window_bounds = array<i64: 10, 8>}, {transform_indices = @transform_1, window_bounds = array<i64: 1, 8>}, {transform_indices = @transform_2, window_bounds = array<i64: 1, 1>}]} {
    %c0_i32 = arith.constant 0 : i32
    %0 = arith.cmpi eq, %arg0, %c0_i32 : i32
    %1 = arith.extui %0 : i1 to i32
    %c0_i32_0 = arith.constant 0 : i32
    %2 = arith.cmpi ne, %1, %c0_i32_0 : i32
    scf.if %2 {
      %cst_11 = arith.constant 0.000000e+00 : f32
      %27 = vector.broadcast %cst_11 : f32 to vector<1x8xf32>
      %c0_12 = arith.constant 0 : index
      %c0_13 = arith.constant 0 : index
      %28 = vector.load %arg4[%c0_12, %c0_13] : memref<1x8xf32, #tpu.memory_space<vmem>>, vector<1x8xf32>
      tpu.vector_store %arg4[%c0_12, %c0_13], %27 {strides = array<i32>} : memref<1x8xf32, #tpu.memory_space<vmem>>, vector<1x8xf32>,
    } else {
    }
    %c0 = arith.constant 0 : index
    %c0_1 = arith.constant 0 : index
    %3 = vector.load %arg1[%c0, %c0_1] : memref<10x8xf32, #tpu.memory_space<vmem>>, vector<10x8xf32>
    %c0_2 = arith.constant 0 : index
    %c0_3 = arith.constant 0 : index
    %4 = vector.load %arg2[%c0_2, %c0_3] : memref<1x8xi32, #tpu.memory_space<vmem>>, vector<1x8xi32>
    %5 = tpu.iota {dimensions = array<i32: 0>} : vector<10x8xi32>
    %6 = vector.broadcast %4 : vector<1x8xi32> to vector<10x8xi32>
    %7 = arith.cmpi eq, %5, %6 : vector<10x8xi32>
    %cst = arith.constant dense<0xFF800000> : vector<8xf32>
    %8 = vector.multi_reduction <maximumf>, %3, %cst [0] : vector<10x8xf32> to vector<8xf32>
    %9 = vector.shape_cast %8 : vector<8xf32> to vector<1x8xf32>
    %10 = vector.broadcast %9 : vector<1x8xf32> to vector<10x8xf32>
    %11 = arith.subf %3, %10 : vector<10x8xf32>
    %12 = math.exp %11 : vector<10x8xf32>
    %cst_4 = arith.constant dense<0.000000e+00> : vector<8xf32>
    %13 = vector.multi_reduction <add>, %12, %cst_4 [0] : vector<10x8xf32> to vector<8xf32>
    %14 = vector.shape_cast %13 : vector<8xf32> to vector<1x8xf32>
    %15 = math.log %14 : vector<1x8xf32>
    %cst_5 = arith.constant 0.000000e+00 : f32
    %16 = vector.broadcast %cst_5 : f32 to vector<10x8xf32>
    %17 = arith.select %7, %11, %16 : vector<10x8xi1>, vector<10x8xf32>
    %cst_6 = arith.constant dense<0.000000e+00> : vector<8xf32>
    %18 = vector.multi_reduction <add>, %17, %cst_6 [0] : vector<10x8xf32> to vector<8xf32>
    %19 = vector.shape_cast %18 : vector<8xf32> to vector<1x8xf32>
    %20 = arith.subf %19, %15 : vector<1x8xf32>
    %c0_i32_7 = arith.constant 0 : i32
    %21 = arith.cmpi eq, %arg0, %c0_i32_7 : i32
    %c0_i32_8 = arith.constant 0 : i32
    %22 = arith.cmpi slt, %arg0, %c0_i32_8 : i32
    %23 = arith.extui %22 : i1 to i32
    %c0_i32_9 = arith.constant 0 : i32
    %24 = arith.cmpi ne, %23, %c0_i32_9 : i32
    scf.if %24 {
      %c0_11 = arith.constant 0 : index
      %c0_12 = arith.constant 0 : index
      %27 = vector.load %arg4[%c0_11, %c0_12] : memref<1x8xf32, #tpu.memory_space<vmem>>, vector<1x8xf32>
      %28 = arith.addf %27, %20 : vector<1x8xf32>
      %c0_13 = arith.constant 0 : index
      %c0_14 = arith.constant 0 : index
      %29 = vector.load %arg4[%c0_13, %c0_14] : memref<1x8xf32, #tpu.memory_space<vmem>>, vector<1x8xf32>
      tpu.vector_store %arg4[%c0_13, %c0_14], %28 {strides = array<i32>} : memref<1x8xf32, #tpu.memory_space<vmem>>, vector<1x8xf32>,
    } else {
    }
    %25 = arith.extui %21 : i1 to i32
    %c0_i32_10 = arith.constant 0 : i32
    %26 = arith.cmpi ne, %25, %c0_i32_10 : i32
    scf.if %26 {
      %27 = tpu.iota {dimensions = array<i32: 1>} : vector<1x8xi32>
      %c8_i32 = arith.constant 8 : i32
      %28 = arith.muli %arg0, %c8_i32 : i32
      %29 = vector.broadcast %28 : i32 to vector<1x8xi32>
      %30 = arith.addi %27, %29 : vector<1x8xi32>
      %c8_i32_11 = arith.constant 8 : i32
      %31 = vector.broadcast %c8_i32_11 : i32 to vector<1x8xi32>
      %32 = arith.cmpi slt, %30, %31 : vector<1x8xi32>
      %c0_12 = arith.constant 0 : index
      %c0_13 = arith.constant 0 : index
      %33 = vector.load %arg4[%c0_12, %c0_13] : memref<1x8xf32, #tpu.memory_space<vmem>>, vector<1x8xf32>
      %cst_14 = arith.constant 0.000000e+00 : f32
      %34 = vector.broadcast %cst_14 : f32 to vector<1x8xf32>
      %35 = arith.select %32, %20, %34 : vector<1x8xi1>, vector<1x8xf32>
      %36 = arith.addf %33, %35 : vector<1x8xf32>
      %c0_15 = arith.constant 0 : index
      %c0_16 = arith.constant 0 : index
      %37 = vector.load %arg4[%c0_15, %c0_16] : memref<1x8xf32, #tpu.memory_space<vmem>>, vector<1x8xf32>
      tpu.vector_store %arg4[%c0_15, %c0_16], %36 {strides = array<i32>} : memref<1x8xf32, #tpu.memory_space<vmem>>, vector<1x8xf32>,
      %c0_17 = arith.constant 0 : index
      %c0_18 = arith.constant 0 : index
      %38 = vector.load %arg4[%c0_17, %c0_18] : memref<1x8xf32, #tpu.memory_space<vmem>>, vector<1x8xf32>
      %39 = vector.shape_cast %38 : vector<1x8xf32> to vector<1x1x8xf32>
      %cst_19 = arith.constant dense<0.000000e+00> : vector<1xf32>
      %40 = vector.multi_reduction <add>, %39, %cst_19 [1, 2] : vector<1x1x8xf32> to vector<1xf32>
      %41 = vector.shape_cast %40 : vector<1xf32> to vector<1x1x1xf32>
      %42 = vector.extract %41[0, 0, 0] : f32 from vector<1x1x1xf32>
      %cst_20 = arith.constant -1.250000e-01 : f32
      %43 = arith.mulf %42, %cst_20 : f32
      %c0_21 = arith.constant 0 : index
      %c0_22 = arith.constant 0 : index
      %44 = memref.load %arg3[%c0_21, %c0_22] : memref<1x1xf32, #tpu.memory_space<smem>>
      memref.store %43, %arg3[%c0_21, %c0_22] : memref<1x1xf32, #tpu.memory_space<smem>>
    } else {
    }
    return
  }
  func.func @transform_0(%arg0: i32) -> (i32, i32) {
    %c0_i32 = arith.constant 0 : i32
    %c0_i32_0 = arith.constant 0 : i32
    return %c0_i32, %arg0 : i32, i32
  }
  func.func @transform_1(%arg0: i32) -> (i32, i32) {
    %c0_i32 = arith.constant 0 : i32
    %c0_i32_0 = arith.constant 0 : i32
    return %c0_i32, %arg0 : i32, i32
  }
  func.func @transform_2(%arg0: i32) -> (i32, i32) {
    %c0_i32 = arith.constant 0 : i32
    %c0_i32_0 = arith.constant 0 : i32
    %c0_i32_1 = arith.constant 0 : i32
    return %c0_i32, %c0_i32_0 : i32, i32
  }
}

</mosaic_0001>

<bundles_post_ra>
// kernel: tpu_custom_call.1
= control target key start
LH: loop header
LB: loop body
LE: loop exit
PB: predicated region body
PF: predicated region fallthrough
CT: control target
= control target key end

     0   :  { %vm16_vm0 = vcmask 57344   ;;  %vm30_vm1 = vcmask 64512   ;;  %v142_v2 = vmov 0.0   ;;  %vm32_vm2 = vcmask 58368   ;;  %s189_s0 = inlined_call_operand.vmem [shape: f32[10,8], index: 0, kind: input, shape index: {}]   ;;  %s190_s1 = inlined_call_operand.vmem [shape: s32[1,8], index: 1, kind: input, shape index: {}]   ;;  %s191_s2 = inlined_call_operand.hbm [shape: f32[1,1], index: 2, kind: output, shape index: {}]  }
   0x1   :  { %v18_v0 = vld [vmem:[%s189_s0] sm:$0xff]  ;;  %v19_v1 = vld [vmem:[%s189_s0 + $0x8] sm:$0x3]  ;;  %17 = vst.msk [vmem:[#allocation2] sm:$0x1] %vm16_vm0, %v142_v2 }
   0x2   :  { %v31_v3 = vsel %vm30_vm1, %v18_v0, -inf }
   0x3   :  { %7 = vsyncpa [#allocation4], 0  ;;  %v33_v4 = vsel %vm32_vm2, %v19_v1, -inf  ;;  %v21_v10 = vlaneseq  ;;  %v119_v19 = vld [vmem:[%s190_s1] ss:$0 sm:$0xff]  ;;  %s130_s17 = scalar_lea.hbm %s191_s2, 16 }
   0x4   :  { %v34_v5 = vmax.f32 %v31_v3, %v33_v4  ;;  %p131_p0 = scmp.ne.s32.totalorder %s191_s2, %s130_s17  ;;  %p134_p1 = scmp.lt.u32.totalorder %s130_s17, %s191_s2 }
   0x5   :  { %v22_v13 = vshrl.u32 %v21_v10, 7  ;;  %v82_v41 = vand.u32 127, %v21_v10 }
   0x6   :  { %v35_v6 = vrot.slane %v34_v5, 4  ;;  %p136_p2 = pnand %p134_p1, %p131_p0 }
   0x7   :  { %v23_v18 = vadd.s32 8, %v22_v13  ;;  %vm28_vm3 = vcmp.eq.s32.totalorder %v22_v13, %v119_v19  ;;  %vm86_vm5 = vcmp.lt.s32.totalorder %v82_v41, 8 }
   0x8   :  { %v36_v7 = vmax.f32 %v34_v5, %v35_v6  ;;  %v87_v46 = vld [vmem:[#allocation2] sm:$0x1] }
   0x9   :  { %vm29_vm4 = vcmp.eq.s32.totalorder %v23_v18, %v119_v19 }
   0xa   :  { %v37_v8 = vrot.slane %v36_v7, 2 }
   0xc   :  { %v38_v9 = vmax.f32 %v36_v7, %v37_v8 }
   0xe   :  { %v39_v11 = vrot.slane %v38_v9, 1 }
  0x10   :  { %v40_v12 = vmax.f32 %v38_v9, %v39_v11 }
  0x12   :  { %v41_v14 = vsub.f32 %v18_v0, %v40_v12  ;;  %v42_v15 = vsub.f32 %v19_v1, %v40_v12 }
  0x14   :  { %v43_v16 = vmul.f32 1.442695, %v41_v14  ;;  %v45_v17 = vmul.f32 1.442695, %v42_v15  ;;  %v58_v20 = vsel %vm28_vm3, %v41_v14, 0.0  ;;  %v59_v21 = vsel %vm29_vm4, %v42_v15, 0.0 }
  0x15   :  { %v60_v22 = vsel %vm30_vm1, %v58_v20, 0.0  ;;  %v61_v23 = vsel %vm32_vm2, %v59_v21, 0.0 }
  0x16   :  { %124 = vpow2.f32 %v43_v16  ;;  %v62_v28 = vadd.f32 %v61_v23, %v60_v22 }
  0x17   :  { %126 = vpow2.f32 %v45_v17 }
  0x18   :  { %v63_v31 = vrot.slane %v62_v28, 4 }
  0x1a   :  { %v64_v34 = vadd.f32 %v63_v31, %v62_v28 }
  0x1c   :  { %v65_v37 = vrot.slane %v64_v34, 2 }
  0x1e   :  { %v66_v39 = vadd.f32 %v65_v37, %v64_v34 }
  0x20   :  { %v125_v24 = vpop.eup %124  ;;  %v67_v40 = vrot.slane %v66_v39, 1 }
  0x21   :  { %v127_v25 = vpop.eup %126  ;;  %v47_v26 = vsel %vm30_vm1, %v125_v24, 0.0 }
  0x22   :  { %v48_v27 = vsel %vm32_vm2, %v127_v25, 0.0  ;;  %v68_v42 = vadd.f32 %v67_v40, %v66_v39 }
  0x23   :  { %v49_v29 = vadd.f32 %v48_v27, %v47_v26 }
  0x25   :  { %v50_v30 = vrot.slane %v49_v29, 4 }
  0x27   :  { %v51_v32 = vadd.f32 %v50_v30, %v49_v29 }
  0x29   :  { %v52_v33 = vrot.slane %v51_v32, 2 }
  0x2b   :  { %v53_v35 = vadd.f32 %v52_v33, %v51_v32 }
  0x2d   :  { %v54_v36 = vrot.slane %v53_v35, 1 }
  0x2f   :  { %v55_v38 = vadd.f32 %v54_v36, %v53_v35 }
  0x31   :  { %128 = vlog2.f32 %v55_v38 }
  0x3b   :  { %v129_v43 = vpop.eup %128 }
  0x3c   :  { %v57_v44 = vmul.f32 0.6931472, %v129_v43 }
  0x3e   :  { %v69_v45 = vsub.f32 %v68_v42, %v57_v44 }
  0x40   :  { %v88_v47 = vsel %vm86_vm5, %v69_v45, 0.0 }
  0x41   :  { %v89_v48 = vadd.f32 %v88_v47, %v87_v46 }
  0x43   :  { %91 = vst.msk [vmem:[#allocation2] sm:$0x1] %vm16_vm0, %v89_v48 }
  0x4a   :  { %v92_v49 = vld [vmem:[#allocation2] sm:$0x1] }
  0x4b   :  { %v93_v50 = vsel %vm16_vm0, %v92_v49, 0.0 }
  0x4c   :  { %94 = vadd.xlane.f32.xlu0 %v93_v50 }
  0xd9   :  { %v95_v51 = vpop.xlane.xlu0 %94 }
  0xda   :  { %v96_v52 = vrot.slane %v95_v51, 4 }
  0xdc   :  { %v97_v53 = vadd.f32 %v96_v52, %v95_v51 }
  0xde   :  { %v98_v54 = vrot.slane %v97_v53, 2 }
  0xe0   :  { %v99_v55 = vadd.f32 %v98_v54, %v97_v53 }
  0xe2   :  { %v100_v56 = vrot.slane %v99_v55, 1 }
  0xe4   :  { %v101_v57 = vadd.f32 %v100_v56, %v99_v55 }
  0xe6   :  { %120 = vpush %v101_v57 }
 0x117   :  { %s121_s1 = spop %120 }
 0x118   :  { %s103_s14 = smul.f32 -0.125, %s121_s1 }
 0x11a   :  { %105 = sst [smem:[#allocation3]] %s103_s14 }
 0x11b   :  { %139 = shalt.err (!%p136_p2)
}
 0x11c   :  { %s143_s22 = smov [#allocation3]  }
 0x11d   :  { %113 = dma.smem_to_hbm %s143_s22, 16, %s191_s2, [#allocation4]  }
 0x11e   :  { %140 = dma.done.wait [#allocation4], 16  }
 0x11f   :  { %141 = vsyncadd [#allocation4], 4294967280 }
 0x120   :  { %117 = sfence }
 0x121   :  { %118 = vsyncpa [#allocation4], 1 }

</bundles_post_ra>
